<compile_context>
chip_gen: v6e
topology: v6e:2x2x1
jax: 0.10.0
libtpu: 0.0.40
codegen_flags: <defaults>
</compile_context>

<pallas_src>
import jax
import jax.numpy as jnp
from jax import lax
from jax.experimental import pallas as pl
from jax.experimental.pallas import tpu as pltpu

LN_EPS = 1e-5  # PyTorch nn.LayerNorm default


def _round_up(x, m):
    return (x + m - 1) // m * m


def _layernorm_store(y, x_res, p_ref, o_ref):
    """y, x_res in f32; p_ref rows: 0 = b2 (already added), 1 = gamma, 2 = beta."""
    r = y + x_res
    mean = jnp.mean(r, axis=-1, keepdims=True)
    cent = r - mean
    var = jnp.mean(cent * cent, axis=-1, keepdims=True)   # biased, like PyTorch
    norm = cent * lax.rsqrt(var + LN_EPS)
    o_ref[...] = (norm * p_ref[1:2, :] + p_ref[2:3, :]).astype(o_ref.dtype)


def ffn_kernel_resident(x_ref, w1_ref, b1_ref, w2_ref, p_ref, o_ref):
    """Whole W1/W2 resident in VMEM; single pass per row tile."""
    x = x_ref[...]                                        # native dtype on MXU
    h = jnp.dot(x, w1_ref[...], preferred_element_type=jnp.float32)
    h = jnp.maximum(h + b1_ref[...], 0.0)
    y = jnp.dot(h.astype(w2_ref.dtype), w2_ref[...],
                preferred_element_type=jnp.float32)
    y = y + p_ref[0:1, :]                                 # + b2
    # TODO(synk): dropout omitted (identity, i.e. inference / p=0 path)
    _layernorm_store(y, x.astype(jnp.float32), p_ref, o_ref)


def ffn_kernel_stream(x_ref, w1_ref, b1_ref, w2_ref, p_ref, o_ref, acc_ref):
    """Hidden dim streamed in tk chunks over grid axis 1; f32 accumulator."""
    k = pl.program_id(1)
    x = x_ref[...]
    h = jnp.dot(x, w1_ref[...], preferred_element_type=jnp.float32)
    h = jnp.maximum(h + b1_ref[...], 0.0)
    partial = jnp.dot(h.astype(w2_ref.dtype), w2_ref[...],
                      preferred_element_type=jnp.float32)

    @pl.when(k == 0)
    def _():
        acc_ref[...] = partial            # init with first product (no zero pass)

    @pl.when(k > 0)
    def _():
        acc_ref[...] += partial

    @pl.when(k == pl.num_programs(1) - 1)
    def _():
        y = acc_ref[...] + p_ref[0:1, :]  # + b2
        # TODO(synk): dropout omitted (identity, i.e. inference / p=0 path)
        _layernorm_store(y, x.astype(jnp.float32), p_ref, o_ref)


def positionwise_ffn(x, w1, b1, w2, b2, gamma, beta, *,
                     tm=None, tk_max=512, matmul_dtype=None,
                     vmem_limit_bytes=None, force_stream=False):
    """x: (B, L, d_in). w1: (d_in, d_hid), w2: (d_hid, d_in) (pre-transposed)."""
    B, L, d_in = x.shape
    d_hid = w1.shape[1]
    rows = B * L

    x2 = x.reshape(rows, d_in)
    if matmul_dtype is not None:
        x2 = x2.astype(matmul_dtype)
        w1 = w1.astype(matmul_dtype)
        w2 = w2.astype(matmul_dtype)

    x_itm = jnp.dtype(x2.dtype).itemsize
    w_itm = jnp.dtype(w1.dtype).itemsize

    # ---- per-core VMEM budget -------------------------------------------------
    if vmem_limit_bytes is None:
        try:
            phys = getattr(pltpu.get_tpu_info(), "vmem_capacity_bytes",
                           64 * 1024 * 1024)
        except Exception:
            phys = 64 * 1024 * 1024                 # v7x per-core size: safe anywhere
        vmem_limit_bytes = max(32 << 20, min(int(phys * 0.8), 100 << 20))
    budget = int(vmem_limit_bytes * 0.9)

    # ---- resident-vs-streamed weight decision ----------------------------------
    tm_resident = 256
    w_bytes = 2 * d_in * d_hid * w_itm * 2          # W1 + W2, double buffered
    xo_bytes = 2 * tm_resident * d_in * x_itm * 2   # x tile + out tile, dbl buffered
    h_bytes = tm_resident * d_hid * 4               # f32 hidden activation temp
    misc = 3 * tm_resident * d_in * 4 + 2 * (d_hid + 3 * d_in) * 4
    resident = (not force_stream) and (w_bytes + xo_bytes + h_bytes + misc <= budget)

    # ---- row tile ---------------------------------------------------------------
    if tm is None:
        tm = tm_resident if resident else 768       # big tile when weights stream
    tm = min(tm, _round_up(rows, 8))
    if rows > 8 and _round_up(rows, tm) // tm < 2:
        # keep >= 2 row tiles so the "parallel" axis can feed both megacore TCs
        tm = max(8, _round_up(_round_up(rows, 16) // 2, 8))
    rows_p = _round_up(rows, tm)
    if rows_p != rows:
        x2 = jnp.pad(x2, ((0, rows_p - rows), (0, 0)))

    b1_f = b1.astype(jnp.float32).reshape(1, d_hid)
    params = jnp.stack([b2.astype(jnp.float32),
                        gamma.astype(jnp.float32),
                        beta.astype(jnp.float32)], axis=0)    # (3, d_in) packed

    if resident:
        out = pl.pallas_call(
            ffn_kernel_resident,
            out_shape=jax.ShapeDtypeStruct((rows_p, d_in), x.dtype),
            grid_spec=pltpu.PrefetchScalarGridSpec(
                num_scalar_prefetch=0,
                grid=(rows_p // tm,),
                in_specs=[
                    pl.BlockSpec((tm, d_in), lambda i: (i, 0)),      # x rows
                    pl.BlockSpec((d_in, d_hid), lambda i: (0, 0)),   # W1 (resident)
                    pl.BlockSpec((1, d_hid), lambda i: (0, 0)),      # b1
                    pl.BlockSpec((d_hid, d_in), lambda i: (0, 0)),   # W2 (resident)
                    pl.BlockSpec((3, d_in), lambda i: (0, 0)),       # b2/gamma/beta
                ],
                out_specs=pl.BlockSpec((tm, d_in), lambda i: (i, 0)),
            ),
            compiler_params=pltpu.CompilerParams(
                dimension_semantics=("parallel",),
                vmem_limit_bytes=vmem_limit_bytes,
            ),
        )(x2, w1, b1_f, w2, params)
    else:
        # Pad d_hid to a multiple of 128, then take the largest 128-multiple
        # divisor <= tk_max (padding is semantically safe: zero W1 cols / zero
        # b1 -> relu -> 0; zero W2 rows contribute 0).
        d_hid_p = _round_up(d_hid, 128)
        tk = 128
        t = max(128, (tk_max // 128) * 128)
        while t >= 128:
            if d_hid_p % t == 0:
                tk = t
                break
            t -= 128
        if d_hid_p != d_hid:
            w1 = jnp.pad(w1, ((0, 0), (0, d_hid_p - d_hid)))
            w2 = jnp.pad(w2, ((0, d_hid_p - d_hid), (0, 0)))
            b1_f = jnp.pad(b1_f, ((0, 0), (0, d_hid_p - d_hid)))
        n_k = d_hid_p // tk

        out = pl.pallas_call(
            ffn_kernel_stream,
            out_shape=jax.ShapeDtypeStruct((rows_p, d_in), x.dtype),
            grid_spec=pltpu.PrefetchScalarGridSpec(
                num_scalar_prefetch=0,
                grid=(rows_p // tm, n_k),
                in_specs=[
                    pl.BlockSpec((tm, d_in), lambda i, k: (i, 0)),   # x rows
                    pl.BlockSpec((d_in, tk), lambda i, k: (0, k)),   # W1 chunk
                    pl.BlockSpec((1, tk), lambda i, k: (0, k)),      # b1 chunk
                    pl.BlockSpec((tk, d_in), lambda i, k: (k, 0)),   # W2 chunk
                    pl.BlockSpec((3, d_in), lambda i, k: (0, 0)),    # b2/gamma/beta
                ],
                out_specs=pl.BlockSpec((tm, d_in), lambda i, k: (i, 0)),
                scratch_shapes=[pltpu.VMEM((tm, d_in), jnp.float32)],
            ),
            compiler_params=pltpu.CompilerParams(
                dimension_semantics=("parallel", "arbitrary"),
                vmem_limit_bytes=vmem_limit_bytes,
            ),
        )(x2, w1, b1_f, w2, params)

    if rows_p != rows:
        out = out[:rows]
    return out.reshape(B, L, d_in)


if __name__ == "__main__":
    B, L, d_in, d_hid = 2, 8, 32, 64

    key = jax.random.PRNGKey(0)
    kx, kw1, kb1, kw2, kb2 = jax.random.split(key, 5)

    x = jax.random.normal(kx, (B, L, d_in), dtype=jnp.float32)

    # Conv1d(d_in, d_hid, 1): weight (d_hid, d_in, 1) -> stored transposed (d_in, d_hid)
    lim1 = 1.0 / (d_in ** 0.5)
    w1 = jax.random.uniform(kw1, (d_in, d_hid), jnp.float32, -lim1, lim1)
    b1 = jax.random.uniform(kb1, (d_hid,), jnp.float32, -lim1, lim1)

    # Conv1d(d_hid, d_in, 1): weight (d_in, d_hid, 1) -> stored transposed (d_hid, d_in)
    lim2 = 1.0 / (d_hid ** 0.5)
    w2 = jax.random.uniform(kw2, (d_hid, d_in), jnp.float32, -lim2, lim2)
    b2 = jax.random.uniform(kb2, (d_in,), jnp.float32, -lim2, lim2)

    gamma = jnp.ones((d_in,), jnp.float32)
    beta = jnp.zeros((d_in,), jnp.float32)

    # pure-JAX reference
    h = jnp.maximum(jnp.einsum("bld,dh->blh", x, w1) + b1, 0.0)
    y = jnp.einsum("blh,hd->bld", h, w2) + b2
    r = y + x
    mu = jnp.mean(r, axis=-1, keepdims=True)
    va = jnp.mean((r - mu) ** 2, axis=-1, keepdims=True)
    ref = (r - mu) / jnp.sqrt(va + LN_EPS) * gamma + beta

    # Fast (resident-weight) path
    out = positionwise_ffn(x, w1, b1, w2, b2, gamma, beta)
    jax.block_until_ready(out)
    assert jnp.allclose(out, ref, atol=1e-5, rtol=1e-5), "resident path mismatch"

    # Streaming (hidden-dim-chunked) path, exercised explicitly
    out_s = positionwise_ffn(x, w1, b1, w2, b2, gamma, beta, force_stream=True)
    jax.block_until_ready(out_s)
    assert jnp.allclose(out_s, ref, atol=1e-5, rtol=1e-5), "stream path mismatch"

    print("KERNEL_OK")
</pallas_src>

<mosaic_0001>
module attributes {stable_mosaic.version = 11 : i64} {
  func.func @ffn_kernel_resident(%arg0: i32, %arg1: memref<8x32xf32, #tpu.memory_space<vmem>>, %arg2: memref<32x64xf32, #tpu.memory_space<vmem>>, %arg3: memref<1x64xf32, #tpu.memory_space<vmem>>, %arg4: memref<64x32xf32, #tpu.memory_space<vmem>>, %arg5: memref<3x32xf32, #tpu.memory_space<vmem>>, %arg6: memref<8x32xf32, #tpu.memory_space<vmem>>) attributes {dimension_semantics = [#tpu.dimension_semantics<parallel>], iteration_bounds = array<i64: 2>, scalar_prefetch = 0 : i64, scratch_operands = 0 : i64, tpu.core_type = #tpu.core_type<tc>, window_params = [{transform_indices = @transform_0, window_bounds = array<i64: 8, 32>}, {pipeline_mode = #tpu.pipeline_mode<synchronous>, transform_indices = @transform_1, window_bounds = array<i64: 32, 64>}, {pipeline_mode = #tpu.pipeline_mode<synchronous>, transform_indices = @transform_2, window_bounds = array<i64: 1, 64>}, {pipeline_mode = #tpu.pipeline_mode<synchronous>, transform_indices = @transform_3, window_bounds = array<i64: 64, 32>}, {pipeline_mode = #tpu.pipeline_mode<synchronous>, transform_indices = @transform_4, window_bounds = array<i64: 3, 32>}, {transform_indices = @transform_5, window_bounds = array<i64: 8, 32>}]} {
    %c0 = arith.constant 0 : index
    %c0_0 = arith.constant 0 : index
    %0 = vector.load %arg1[%c0, %c0_0] : memref<8x32xf32, #tpu.memory_space<vmem>>, vector<8x32xf32>
    %c0_1 = arith.constant 0 : index
    %c0_2 = arith.constant 0 : index
    %1 = vector.load %arg2[%c0_1, %c0_2] : memref<32x64xf32, #tpu.memory_space<vmem>>, vector<32x64xf32>
    %cst = arith.constant dense<0.000000e+00> : vector<8x64xf32>
    %2 = tpu.matmul %0, %1, %cst {dimension_numbers = #tpu.dot_dimension_numbers<[1], [0], [0], [1], [0, 0, 1, 1], [], []>} : vector<8x32xf32>, vector<32x64xf32>, vector<8x64xf32> -> vector<8x64xf32>
    %c0_3 = arith.constant 0 : index
    %c0_4 = arith.constant 0 : index
    %3 = vector.load %arg3[%c0_3, %c0_4] : memref<1x64xf32, #tpu.memory_space<vmem>>, vector<1x64xf32>
    %4 = vector.broadcast %3 : vector<1x64xf32> to vector<8x64xf32>
    %5 = arith.addf %2, %4 : vector<8x64xf32>
    %cst_5 = arith.constant 0.000000e+00 : f32
    %6 = vector.broadcast %cst_5 : f32 to vector<8x64xf32>
    %7 = arith.maximumf %5, %6 : vector<8x64xf32>
    %c0_6 = arith.constant 0 : index
    %c0_7 = arith.constant 0 : index
    %8 = vector.load %arg4[%c0_6, %c0_7] : memref<64x32xf32, #tpu.memory_space<vmem>>, vector<64x32xf32>
    %cst_8 = arith.constant dense<0.000000e+00> : vector<8x32xf32>
    %9 = tpu.matmul %7, %8, %cst_8 {dimension_numbers = #tpu.dot_dimension_numbers<[1], [0], [0], [1], [0, 0, 1, 1], [], []>} : vector<8x64xf32>, vector<64x32xf32>, vector<8x32xf32> -> vector<8x32xf32>
    %c0_9 = arith.constant 0 : index
    %c0_10 = arith.constant 0 : index
    %10 = vector.load %arg5[%c0_9, %c0_10] : memref<3x32xf32, #tpu.memory_space<vmem>>, vector<1x32xf32>
    %11 = vector.broadcast %10 : vector<1x32xf32> to vector<8x32xf32>
    %12 = arith.addf %9, %11 : vector<8x32xf32>
    %13 = arith.addf %12, %0 : vector<8x32xf32>
    %cst_11 = arith.constant dense<0.000000e+00> : vector<8xf32>
    %14 = vector.multi_reduction <add>, %13, %cst_11 [1] : vector<8x32xf32> to vector<8xf32>
    %15 = vector.shape_cast %14 : vector<8xf32> to vector<8x1xf32>
    %cst_12 = arith.constant 3.200000e+01 : f32
    %16 = vector.broadcast %cst_12 : f32 to vector<8x1xf32>
    %17 = arith.divf %15, %16 : vector<8x1xf32>
    %18 = vector.broadcast %17 : vector<8x1xf32> to vector<8x32xf32>
    %19 = arith.subf %13, %18 : vector<8x32xf32>
    %20 = arith.mulf %19, %19 : vector<8x32xf32>
    %cst_13 = arith.constant dense<0.000000e+00> : vector<8xf32>
    %21 = vector.multi_reduction <add>, %20, %cst_13 [1] : vector<8x32xf32> to vector<8xf32>
    %22 = vector.shape_cast %21 : vector<8xf32> to vector<8x1xf32>
    %cst_14 = arith.constant 3.200000e+01 : f32
    %23 = vector.broadcast %cst_14 : f32 to vector<8x1xf32>
    %24 = arith.divf %22, %23 : vector<8x1xf32>
    %cst_15 = arith.constant 9.99999974E-6 : f32
    %25 = vector.broadcast %cst_15 : f32 to vector<8x1xf32>
    %26 = arith.addf %24, %25 : vector<8x1xf32>
    %27 = math.rsqrt %26 : vector<8x1xf32>
    %28 = vector.broadcast %27 : vector<8x1xf32> to vector<8x32xf32>
    %29 = arith.mulf %19, %28 : vector<8x32xf32>
    %c1 = arith.constant 1 : index
    %c0_16 = arith.constant 0 : index
    %30 = vector.load %arg5[%c1, %c0_16] : memref<3x32xf32, #tpu.memory_space<vmem>>, vector<1x32xf32>
    %31 = vector.broadcast %30 : vector<1x32xf32> to vector<8x32xf32>
    %32 = arith.mulf %29, %31 : vector<8x32xf32>
    %c2 = arith.constant 2 : index
    %c0_17 = arith.constant 0 : index
    %33 = vector.load %arg5[%c2, %c0_17] : memref<3x32xf32, #tpu.memory_space<vmem>>, vector<1x32xf32>
    %34 = vector.broadcast %33 : vector<1x32xf32> to vector<8x32xf32>
    %35 = arith.addf %32, %34 : vector<8x32xf32>
    %c0_18 = arith.constant 0 : index
    %c0_19 = arith.constant 0 : index
    %36 = vector.load %arg6[%c0_18, %c0_19] : memref<8x32xf32, #tpu.memory_space<vmem>>, vector<8x32xf32>
    tpu.vector_store %arg6[%c0_18, %c0_19], %35 {strides = array<i32>} : memref<8x32xf32, #tpu.memory_space<vmem>>, vector<8x32xf32>,
    return
  }
  func.func @transform_0(%arg0: i32) -> (i32, i32) {
    %c0_i32 = arith.constant 0 : i32
    %c0_i32_0 = arith.constant 0 : i32
    return %arg0, %c0_i32 : i32, i32
  }
  func.func @transform_1(%arg0: i32) -> (i32, i32) {
    %c0_i32 = arith.constant 0 : i32
    %c0_i32_0 = arith.constant 0 : i32
    %c0_i32_1 = arith.constant 0 : i32
    return %c0_i32, %c0_i32_0 : i32, i32
  }
  func.func @transform_2(%arg0: i32) -> (i32, i32) {
    %c0_i32 = arith.constant 0 : i32
    %c0_i32_0 = arith.constant 0 : i32
    %c0_i32_1 = arith.constant 0 : i32
    return %c0_i32, %c0_i32_0 : i32, i32
  }
  func.func @transform_3(%arg0: i32) -> (i32, i32) {
    %c0_i32 = arith.constant 0 : i32
    %c0_i32_0 = arith.constant 0 : i32
    %c0_i32_1 = arith.constant 0 : i32
    return %c0_i32, %c0_i32_0 : i32, i32
  }
  func.func @transform_4(%arg0: i32) -> (i32, i32) {
    %c0_i32 = arith.constant 0 : i32
    %c0_i32_0 = arith.constant 0 : i32
    %c0_i32_1 = arith.constant 0 : i32
    return %c0_i32, %c0_i32_0 : i32, i32
  }
  func.func @transform_5(%arg0: i32) -> (i32, i32) {
    %c0_i32 = arith.constant 0 : i32
    %c0_i32_0 = arith.constant 0 : i32
    return %arg0, %c0_i32 : i32, i32
  }
}

</mosaic_0001>

<bundles_post_ra>
// kernel: tpu_custom_call.1
= control target key start
LH: loop header
LB: loop body
LE: loop exit
PB: predicated region body
PF: predicated region fallthrough
CT: control target
= control target key end

     0   :  { %10 = vsyncpa [#allocation3], 0  ;;  %s834_s0 = inlined_call_operand.vmem [shape: f32[16,32], index: 0, kind: input, shape index: {}]   ;;  %s835_s1 = inlined_call_operand.vmem [shape: f32[32,64], index: 1, kind: input, shape index: {}]   ;;  %s836_s2 = inlined_call_operand.vmem [shape: f32[1,64], index: 2, kind: input, shape index: {}]   ;;  %s837_s3 = inlined_call_operand.vmem [shape: f32[64,32], index: 3, kind: input, shape index: {}]   ;;  %s838_s4 = inlined_call_operand.vmem [shape: f32[3,32], index: 4, kind: input, shape index: {}]   ;;  %s839_s5 = inlined_call_operand.hbm [shape: f32[16,32], index: 5, kind: output, shape index: {}]  }
   0x1   :  { %12 = vsyncpa [#allocation3 + $0x1], 0  ;;  %s693_s18 = smov 0   ;;  %s695_s19 = smov 0  }
   0x2   :  { %s697_s20 = smov 0   ;;  %s699_s21 = smov 0  }
   0x3 LB: > { %s714_s22 = sadd.s32 4294967295, %s658_s21   ;;  %s495_s23 = sadd.s32 4294967294, %s658_s21   ;;  %s658_s21 = sphi %s699_s21, %s845_s21   ;;  %s654_s20 = sphi %s697_s20, %s844_s20   ;;  %s650_s19 = sphi %s695_s19, %s843_s19   ;;  %s646_s18 = sphi %s693_s18, %s842_s18  }
   0x4   : > { %s718_s24 = sadd.s32 1, %s658_s21   ;;  %s135_s25 = sadd.s32 1, %s654_s20 }
   0x5   : > { %s132_s26 = ssub.s32 %s658_s21, %s718_s24  ;;  %p145_p0 = scmp.ne.s32.totalorder %s654_s20, %s650_s19 }
   0x6   : > { %p133_p1 = scmp.eq.s32.totalorder %s132_s26, 0  ;;  %p146_p2 = scmp.eq.s32.totalorder %s714_s22, 1 }
   0x7   : > { %p151_p3 = scmp.ne.s32.totalorder %s650_s19, %s646_s18  ;;  %p152_p4 = scmp.eq.s32.totalorder %s495_s23, 1 }
   0x8   : > { %s729_s27 = scalar_select %p133_p1, %s654_s20, %s135_s25  }
   0x9   : > { %p731_p5 = por %p146_p2, %p145_p0  ;;  %p735_p6 = por %p152_p4, %p151_p3 }
   0xa   : > { %p498_p7 = scmp.ge.s32.totalorder %s658_s21, 1  ;;  %p189_p8 = scmp.lt.s32.totalorder %s658_s21, 3 }
   0xc   : > { %p190_p9 = pnand %p498_p7, %p189_p8 }
   0xd   : > { %p216_p10 = scmp.lt.s32.totalorder (!%p190_p9), %s714_s22, 1  ;;  %s213_s6 = sand.u32 (!%p190_p9), 1, %s650_s19  }
   0xe   : > { %193 = sbr.rel (%p190_p9) target bundleno = 743 (0x2e7), region = 40  ;;  %s508_s12 = sshll.u32 (!%p190_p9), %s714_s22, 7 }
   0xf   : > { %s434_s17 = scalar_lea.hbm (!%p190_p9), %s839_s5, %s508_s12  ;;  %s423_s23 = scalar_lea.sflag (!%p190_p9), [#allocation3], %s213_s6 }
  0x10   : > { %s662_s26 = smov (!%p190_p9), [#allocation2]  }
  0x11   : > { %s602_s30 = sshll.u32 (!%p190_p9), %s662_s26, 4  ;;  %s603_s30 = int_to_ptr.vmem [resolvable:$false] %s602_s30 }
  0x13   : > { %v224_v0 = vld [vmem:[%s835_s1 + $0x18] sm:$0xff]  ;;  %v660_v1 = vmov 0.0   ;;  %v223_v2 = vld [vmem:[%s835_s1 + $0x10] sm:$0xff]  ;;  %vm661_vm0 = vmmov 0   ;;  %s217_s11 = scalar_select %p216_p10, %s714_s22, 1  ;;  %v222_v5 = vld [vmem:[%s835_s1 + $0x8] sm:$0xff] }
  0x14   : > { %525 = vmatprep.subr.mxu0 %v660_v1  ;;  %533 = vmatprep.mubr.msk.f32.mxu0 %vm661_vm0, %v660_v1  ;;  %v314_v3 = vld [vmem:[%s837_s3 + $0x38] sm:$0xff]  ;;  %v313_v4 = vld [vmem:[%s837_s3 + $0x30] sm:$0xff]  ;;  %v312_v6 = vld [vmem:[%s837_s3 + $0x28] sm:$0xff]  ;;  %vm232_vm1 = vcmask 261120   ;;  %vm320_vm2 = vcmask 523264   ;;  %s604_s22 = scalar_lea.vmem %s603_s30, 256 }
  0x15   : > { %526 = vmatpush3.msra.mxu0 %v224_v0  ;;  %536 = vmatprep.subr.mxu1 %v660_v1  ;;  %s500_s16 = sshll.u32 %s217_s11, 3  ;;  %v221_v7 = vld [vmem:[%s835_s1] sm:$0xff]  ;;  %v310_v10 = vld [vmem:[%s837_s3 + $0x18] sm:$0xff]  ;;  %v309_v11 = vld [vmem:[%s837_s3 + $0x10] sm:$0xff] }
  0x16   : > { %527 = vmatprep.subr.mxu0 %v660_v1  ;;  %537 = vmatpush3.msra.mxu1 %v314_v3  ;;  %s219_s7 = scalar_lea.vmem %s834_s0, %s500_s16  ;;  %v311_v9 = vld [vmem:[%s837_s3 + $0x20] sm:$0xff]  ;;  %v308_v12 = vld [vmem:[%s837_s3 + $0x8] sm:$0xff] }
  0x17   : > { %528 = vmatpush3.msra.mxu0 %v223_v2  ;;  %538 = vmatprep.subr.mxu1 %v660_v1  ;;  %v220_v8 = vld [vmem:[%s219_s7] sm:$0xff]  ;;  %s499_s7 = sshll.u32 %s213_s6, 3 }
  0x18   : > { %529 = vmatprep.subr.mxu0 %v660_v1  ;;  %539 = vmatpush3.msra.mxu1 %v313_v4  ;;  %v307_v13 = vld [vmem:[%s837_s3] sm:$0xff]  ;;  %s215_s13 = scalar_lea.vmem [#allocation2], %s499_s7 }
  0x19   : > { %530 = vmatpush3.msra.mxu0 %v222_v5  ;;  %540 = vmatprep.subr.mxu1 %v660_v1  ;;  %v501_v14 = vld [vmem:[%s836_s2] ss:$0 sm:$0xff]  ;;  %v505_v34 = vld [vmem:[%s838_s4 + $0x1] ss:$0 sm:$0xff]  ;;  %v506_v36 = vld [vmem:[%s838_s4 + $0x2] ss:$0 sm:$0xff] }
  0x1a   : > { %531 = vmatprep.subr.mxu0 %v660_v1  ;;  %541 = vmatpush3.msra.mxu1 %v312_v6  ;;  %v503_v19 = vld [vmem:[%s838_s4] ss:$0 sm:$0xff]  ;;  %s436_s14 = sshll.u32 %s215_s13, 4  ;;  %s437_s14 = int_to_ptr.vmem [resolvable:$true] %s436_s14 }
  0x1b   : > { %532 = vmatpush3.msra.mxu0 %v221_v7  ;;  %542 = vmatprep.subr.mxu1 %v660_v1  ;;  %s598_s25 = scalar_lea.vmem %s437_s14, 128  ;;  %p605_p0 = scmp.lt.s32.totalorder %s437_s14, %s603_s30 }
  0x1c   : > { %534 = vmatmul.mubr.msk.f32.vlgmr.msra.gmra.mxu0 %vm232_vm1, %v220_v8  ;;  %543 = vmatpush3.msra.mxu1 %v311_v9  ;;  %p599_p11 = scmp.ne.s32.totalorder %s437_s14, %s598_s25  ;;  %p606_p1 = scmp.lt.s32.totalorder %s604_s22, %s598_s25 }
  0x1d   : > { %544 = vmatprep.subr.mxu1 %v660_v1  ;;  %552 = vmatprep.mubr.msk.f32.mxu1 %vm661_vm0, %v660_v1 }
  0x1e   : > { %545 = vmatpush3.msra.mxu1 %v310_v10  ;;  %p600_p12 = pnand %p599_p11, %p731_p5  ;;  %p607_p2 = por %p606_p1, %p605_p0 }
  0x1f   : > { %546 = vmatprep.subr.mxu1 %v660_v1 }
  0x20   : > { %547 = vmatpush3.msra.mxu1 %v309_v11  ;;  %p601_p13 = pneg %p600_p12 }
  0x21   : > { %548 = vmatprep.subr.mxu1 %v660_v1 }
  0x22   : > { %549 = vmatpush3.msra.mxu1 %v308_v12  ;;  %p608_p3 = pnand %p607_p2, %p601_p13 }
  0x23   : > { %550 = vmatprep.subr.mxu1 %v660_v1 }
  0x24   : > { %551 = vmatpush3.msra.mxu1 %v307_v13 }
  0xdc   : > { %v302_v15 = vpop.f32.mrf.mxu0 }
  0xdd   : > { %v303_v16 = vadd.f32 %v501_v14, %v302_v15 }
  0xde   : > { %v535_v17 = vpop.f32.mrf.mxu0 }
  0xdf   : > { %v306_v18 = vmax.f32 %v303_v16, 0.0 }
  0xe1   : > { %553 = vmatmul.mubr.msk.f32.vlgmr.msra.gmra.mxu1 %vm320_vm2, %v306_v18 }
 0x1a1   : > { %v390_v20 = vpop.f32.mrf.mxu1 }
 0x1a2   : > { %v391_v21 = vadd.f32 %v503_v19, %v390_v20 }
 0x1a3   : > { %v554_v22 = vpop.f32.mrf.mxu1 }
 0x1a4   : > { %v394_v23 = vadd.f32 %v391_v21, %v220_v8 }
 0x1a6   : > { %v395_v24 = vsel %vm232_vm1, %v394_v23, 0.0 }
 0x1a7   : > { %396 = vadd.xlane.f32.xlu0 %v395_v24 }
 0x230   : > { %v397_v25 = vpop.xlane.xlu0 %396 }
 0x231   : > { %v399_v26 = vmul.f32 0.03125, %v397_v25 }
 0x233   : > { %v400_v27 = vsub.f32 %v394_v23, %v399_v26 }
 0x235   : > { %v401_v28 = vmul.f32 %v400_v27, %v400_v27 }
 0x237   : > { %v402_v29 = vsel %vm232_vm1, %v401_v28, 0.0 }
 0x238   : > { %403 = vadd.xlane.f32.xlu0 %v402_v29 }
 0x2c1   : > { %v404_v30 = vpop.xlane.xlu0 %403 }
 0x2c2   : > { %v405_v31 = vmul.f32 0.03125, %v404_v30 }
 0x2c4   : > { %v406_v32 = vadd.f32 1e-05, %v405_v31 }
 0x2c6   : > { %596 = vrsqrt.f32 %v406_v32 }
 0x2d3   : > { %v597_v33 = vpop.eup %596 }
 0x2d4   : > { %v408_v35 = vmul.f32 %v597_v33, %v400_v27 }
 0x2d6   : > { %v414_v37 = vmul.f32 %v505_v34, %v408_v35 }
 0x2d8   : > { %v420_v38 = vadd.f32 %v506_v36, %v414_v37 }
 0x2da   : > { %421 = vst.msk [vmem:[%s215_s13] sm:$0xff] %vm232_vm1, %v420_v38 }
 0x2db   : > { %611 = shalt.err (!%p608_p3)
}
 0x2dc   : > { %s612_s7 = scalar_lea.hbm %s434_s17, 128  ;;  %s616_s9 = scalar_lea.hbm %s839_s5, 256 }
 0x2dd   : > { %p613_p4 = scmp.ne.s32.totalorder %s434_s17, %s612_s7  ;;  %p617_p9 = scmp.lt.s32.totalorder %s434_s17, %s839_s5 }
 0x2de   : > { %p618_p10 = scmp.lt.s32.totalorder %s616_s9, %s612_s7 }
 0x2df   : > { %p614_p7 = pnand %p613_p4, %p731_p5 }
 0x2e0   : > { %p619_p11 = por %p618_p10, %p617_p9 }
 0x2e1   : > { %p615_p8 = pneg %p614_p7 }
 0x2e3   : > { %p620_p12 = pnand %p619_p11, %p615_p8 }
 0x2e5   : > { %623 = shalt.err (!%p620_p12)
}
 0x2e6   : > { %555 = dma.vmem_to_hbm [thread:$0]  (%p731_p5), %s437_s14, 128, %s434_s17, %s423_s23  }
 0x2e7 PF: > { %p561_p13 = scmp.ge.s32.totalorder %s658_s21, 2  ;;  %s448_s12 = sand.u32 1, %s646_s18  }
 0x2e8   : > { %s449_s13 = scalar_lea.sflag [#allocation3], %s448_s12 }
 0x2e9   : > { %p558_p0 = pnand %p561_p13, %p735_p6 }
 0x2eb   : > { %p559_p1 = pneg %p558_p0 }
 0x2ed   : > { %641 = dma.done.wait (%p559_p1), %s449_s13, 128  }
 0x2ee   : > { %643 = vsyncadd (%p559_p1), %s449_s13, 4294967168  ;;  %p15_p2 = scmp.ge.s32.totalorder %s718_s24, 4   ;;  %s842_s18 = smov %s650_s19 }
 0x2ef   : > { %s843_s19 = smov %s654_s20  ;;  %s844_s20 = smov %s729_s27 }
 0x2f0   : > { %s845_s21 = smov %s718_s24  ;;  %17 = sbr.rel (!%p15_p2) target bundleno = 3 (0x3), region = 75 }
 0x2f5   :  { %454 = vsyncpa [#allocation3], 1 }
 0x2f6   :  { %456 = vsyncpa [#allocation3 + $0x1], 1 }

</bundles_post_ra>
